<compile_context>
chip_gen: v7x
topology: tpu7x:2x2x1
jax: 0.10.0
libtpu: 0.0.40
codegen_flags: <defaults>
</compile_context>

<pallas_src>
import functools

import jax
import jax.numpy as jnp
from jax.experimental import pallas as pl
from jax.experimental.pallas import tpu as pltpu

N_PAD = 128  # lane-dense width of the in-kernel intermediate


def _fused_kernel(x1_ref, x2_ref, w1_ref, w2_ref, b1_ref, b2_ref, o_ref, *,
                  f_out):
    # Two small MXU dots (one per Linear); f32 accumulate.
    r1 = jnp.dot(x1_ref[...], w1_ref[...], preferred_element_type=jnp.float32)
    r2 = jnp.dot(x2_ref[...], w2_ref[...], preferred_element_type=jnp.float32)
    r1 = r1 + b1_ref[...]                       # bias adds in f32 on the VPU
    r2 = r2 + b2_ref[...]
    h1 = jnp.maximum(r1, 0.0)
    h2 = jnp.maximum(r2, 0.0)
    p = h1 * h2                                 # `1.0 *` scale dropped
    # Padded lanes (>= f_out) carry zero weight/bias -> relu(0)*relu(0)=0;
    # mask them to -inf so the log-softmax normalizer only sees real lanes.
    lane = jax.lax.broadcasted_iota(jnp.int32, p.shape, dimension=1)
    p = jnp.where(lane < f_out, p, -jnp.inf)
    m = jnp.max(p, axis=-1, keepdims=True)
    s = p - m
    lse = jnp.log(jnp.sum(jnp.exp(s), axis=-1, keepdims=True))
    y = s - lse
    # Store only the real f_out lanes (16x writeback reduction vs. 128-wide).
    o_ref[...] = y[:, :f_out].astype(o_ref.dtype)


def build_padded_params(w1, b1, w2, b2):
    """One-time prep (outside the hot path): lane-padded, transposed params.

    w1, w2: (out, in) PyTorch Linear layout. Returns
      w1p, w2p: (in, N_PAD)  -- W^T in the first `out` lanes, rest zero
      b1p, b2p: (1, N_PAD)
    """
    f_in, f_out = w1.shape[1], w1.shape[0]
    assert f_out <= N_PAD, f"f_out={f_out} exceeds lane width {N_PAD}"
    w1p = jnp.zeros((f_in, N_PAD), jnp.float32).at[:, :f_out].set(
        w1.T.astype(jnp.float32))
    w2p = jnp.zeros((f_in, N_PAD), jnp.float32).at[:, :f_out].set(
        w2.T.astype(jnp.float32))
    b1p = jnp.zeros((1, N_PAD), jnp.float32).at[0, :f_out].set(
        b1.astype(jnp.float32))
    b2p = jnp.zeros((1, N_PAD), jnp.float32).at[0, :f_out].set(
        b2.astype(jnp.float32))
    return w1p, w2p, b1p, b2p


def model_forward(x1, x2, w1p, w2p, b1p, b2p, f_out, *, tb_max=2048):
    """x1, x2: (B, C, H, W) float32 with C*H*W == f_in. Returns (B, f_out)."""
    B = x1.shape[0]
    f_feat = x1.shape[1] * x1.shape[2] * x1.shape[3]
    assert w1p.shape[0] == f_feat, (
        f"flattened feature dim {f_feat} != Linear in_features {w1p.shape[0]}")
    x1f = x1.reshape(B, f_feat).astype(jnp.float32)
    x2f = x2.reshape(B, f_feat).astype(jnp.float32)

    # Batch tiling: sublane-align (multiple of 8); aim for >= 2 grid steps so
    # the "parallel" axis can shard across both v7x TensorCores, capped at
    # tb_max rows (tb=2048 f32 is ~<3 MiB double-buffered -> fits everywhere).
    b8 = -(-B // 8) * 8
    tb = min(tb_max, max(8, (-(-(-(-b8 // 2)) // 8)) * 8))  # round_up(ceil(b8/2), 8)
    b_pad = -(-b8 // tb) * tb
    if b_pad != B:
        x1f = jnp.pad(x1f, ((0, b_pad - B), (0, 0)))
        x2f = jnp.pad(x2f, ((0, b_pad - B), (0, 0)))

    kernel = functools.partial(_fused_kernel, f_out=f_out)
    cost = pl.CostEstimate(
        flops=2 * 2 * b_pad * f_feat * N_PAD,
        transcendentals=b_pad * (N_PAD + 1),
        bytes_accessed=4 * (2 * b_pad * f_feat            # activations in
                            + 2 * f_feat * N_PAD          # weights
                            + 2 * N_PAD                   # biases
                            + b_pad * f_out),             # output
    )
    out = pl.pallas_call(
        kernel,
        out_shape=jax.ShapeDtypeStruct((b_pad, f_out), jnp.float32),
        grid=(b_pad // tb,),
        in_specs=[
            pl.BlockSpec((tb, f_feat), lambda i: (i, 0)),   # x1 (batch-tiled)
            pl.BlockSpec((tb, f_feat), lambda i: (i, 0)),   # x2 (batch-tiled)
            pl.BlockSpec((f_feat, N_PAD), lambda i: (0, 0)),  # W1^T resident
            pl.BlockSpec((f_feat, N_PAD), lambda i: (0, 0)),  # W2^T resident
            pl.BlockSpec((1, N_PAD), lambda i: (0, 0)),       # b1 resident
            pl.BlockSpec((1, N_PAD), lambda i: (0, 0)),       # b2 resident
        ],
        out_specs=pl.BlockSpec((tb, f_out), lambda i: (i, 0)),
        compiler_params=pltpu.CompilerParams(
            dimension_semantics=("parallel",)),
        cost_estimate=cost,
    )(x1f, x2f, w1p, w2p, b1p, b2p)
    return out[:B] if b_pad != B else out


def _reference(x1, x2, w1, b1, w2, b2):
    B = x1.shape[0]
    x1f = x1.reshape(B, -1)
    x2f = x2.reshape(B, -1)
    h1 = jnp.maximum(x1f @ w1.T + b1, 0.0)
    h2 = jnp.maximum(x2f @ w2.T + b2, 0.0)
    p = h1 * h2
    return jax.nn.log_softmax(p, axis=-1)


if __name__ == "__main__":
    key = jax.random.PRNGKey(0)
    k1, k2, kw1, kb1, kw2, kb2 = jax.random.split(key, 6)

    # Inputs chosen so Flatten(start_dim=1) yields 8 features, matching Linear(8, 8).
    B, C, H, W = 2, 2, 2, 2  # flatten -> (2, 8)
    x1 = jax.random.normal(k1, (B, C, H, W), dtype=jnp.float32)
    x2 = jax.random.normal(k2, (B, C, H, W), dtype=jnp.float32)

    # Deterministic parameter init (PyTorch-Linear-like uniform(-1/sqrt(in), 1/sqrt(in))).
    in_f, out_f = 8, 8
    bound = 1.0 / jnp.sqrt(jnp.float32(in_f))
    w1 = jax.random.uniform(kw1, (out_f, in_f), jnp.float32, -bound, bound)
    b1 = jax.random.uniform(kb1, (out_f,), jnp.float32, -bound, bound)
    w2 = jax.random.uniform(kw2, (out_f, in_f), jnp.float32, -bound, bound)
    b2 = jax.random.uniform(kb2, (out_f,), jnp.float32, -bound, bound)

    # One-time parameter prep (outside the per-call hot path).
    w1p, w2p, b1p, b2p = build_padded_params(w1, b1, w2, b2)

    y = model_forward(x1, x2, w1p, w2p, b1p, b2p, out_f)
    jax.block_until_ready(y)

    y_ref = _reference(x1, x2, w1, b1, w2, b2)
    assert y.shape == (B, out_f), f"bad shape {y.shape}"
    assert jnp.allclose(y, y_ref, atol=1e-5, rtol=1e-5), "mismatch vs reference"

    print("KERNEL_OK")
</pallas_src>

<mosaic_0001>
module attributes {stable_mosaic.version = 11 : i64} {
  func.func @_fused_kernel(%arg0: i32, %arg1: memref<8x8xf32, #tpu.memory_space<vmem>>, %arg2: memref<8x8xf32, #tpu.memory_space<vmem>>, %arg3: memref<8x128xf32, #tpu.memory_space<vmem>>, %arg4: memref<8x128xf32, #tpu.memory_space<vmem>>, %arg5: memref<1x128xf32, #tpu.memory_space<vmem>>, %arg6: memref<1x128xf32, #tpu.memory_space<vmem>>, %arg7: memref<8x8xf32, #tpu.memory_space<vmem>>) attributes {dimension_semantics = [#tpu.dimension_semantics<parallel>], iteration_bounds = array<i64: 1>, scalar_prefetch = 0 : i64, scratch_operands = 0 : i64, tpu.core_type = #tpu.core_type<tc>, window_params = [{transform_indices = @transform_0, window_bounds = array<i64: 8, 8>}, {transform_indices = @transform_1, window_bounds = array<i64: 8, 8>}, {pipeline_mode = #tpu.pipeline_mode<synchronous>, transform_indices = @transform_2, window_bounds = array<i64: 8, 128>}, {pipeline_mode = #tpu.pipeline_mode<synchronous>, transform_indices = @transform_3, window_bounds = array<i64: 8, 128>}, {pipeline_mode = #tpu.pipeline_mode<synchronous>, transform_indices = @transform_4, window_bounds = array<i64: 1, 128>}, {pipeline_mode = #tpu.pipeline_mode<synchronous>, transform_indices = @transform_5, window_bounds = array<i64: 1, 128>}, {transform_indices = @transform_6, window_bounds = array<i64: 8, 8>}]} {
    %c0 = arith.constant 0 : index
    %c0_0 = arith.constant 0 : index
    %0 = vector.load %arg1[%c0, %c0_0] : memref<8x8xf32, #tpu.memory_space<vmem>>, vector<8x8xf32>
    %c0_1 = arith.constant 0 : index
    %c0_2 = arith.constant 0 : index
    %1 = vector.load %arg3[%c0_1, %c0_2] : memref<8x128xf32, #tpu.memory_space<vmem>>, vector<8x128xf32>
    %cst = arith.constant dense<0.000000e+00> : vector<8x128xf32>
    %2 = tpu.matmul %0, %1, %cst {dimension_numbers = #tpu.dot_dimension_numbers<[1], [0], [0], [1], [0, 0, 1, 1], [], []>} : vector<8x8xf32>, vector<8x128xf32>, vector<8x128xf32> -> vector<8x128xf32>
    %c0_3 = arith.constant 0 : index
    %c0_4 = arith.constant 0 : index
    %3 = vector.load %arg2[%c0_3, %c0_4] : memref<8x8xf32, #tpu.memory_space<vmem>>, vector<8x8xf32>
    %c0_5 = arith.constant 0 : index
    %c0_6 = arith.constant 0 : index
    %4 = vector.load %arg4[%c0_5, %c0_6] : memref<8x128xf32, #tpu.memory_space<vmem>>, vector<8x128xf32>
    %cst_7 = arith.constant dense<0.000000e+00> : vector<8x128xf32>
    %5 = tpu.matmul %3, %4, %cst_7 {dimension_numbers = #tpu.dot_dimension_numbers<[1], [0], [0], [1], [0, 0, 1, 1], [], []>} : vector<8x8xf32>, vector<8x128xf32>, vector<8x128xf32> -> vector<8x128xf32>
    %c0_8 = arith.constant 0 : index
    %c0_9 = arith.constant 0 : index
    %6 = vector.load %arg5[%c0_8, %c0_9] : memref<1x128xf32, #tpu.memory_space<vmem>>, vector<1x128xf32>
    %7 = vector.broadcast %6 : vector<1x128xf32> to vector<8x128xf32>
    %8 = arith.addf %2, %7 : vector<8x128xf32>
    %c0_10 = arith.constant 0 : index
    %c0_11 = arith.constant 0 : index
    %9 = vector.load %arg6[%c0_10, %c0_11] : memref<1x128xf32, #tpu.memory_space<vmem>>, vector<1x128xf32>
    %10 = vector.broadcast %9 : vector<1x128xf32> to vector<8x128xf32>
    %11 = arith.addf %5, %10 : vector<8x128xf32>
    %cst_12 = arith.constant 0.000000e+00 : f32
    %12 = vector.broadcast %cst_12 : f32 to vector<8x128xf32>
    %13 = arith.maximumf %8, %12 : vector<8x128xf32>
    %cst_13 = arith.constant 0.000000e+00 : f32
    %14 = vector.broadcast %cst_13 : f32 to vector<8x128xf32>
    %15 = arith.maximumf %11, %14 : vector<8x128xf32>
    %16 = arith.mulf %13, %15 : vector<8x128xf32>
    %17 = tpu.iota {dimensions = array<i32: 1>} : vector<8x128xi32>
    %c8_i32 = arith.constant 8 : i32
    %18 = vector.broadcast %c8_i32 : i32 to vector<8x128xi32>
    %19 = arith.cmpi slt, %17, %18 : vector<8x128xi32>
    %cst_14 = arith.constant 0xFF800000 : f32
    %20 = vector.broadcast %cst_14 : f32 to vector<8x128xf32>
    %21 = arith.select %19, %16, %20 : vector<8x128xi1>, vector<8x128xf32>
    %cst_15 = arith.constant dense<0xFF800000> : vector<8xf32>
    %22 = vector.multi_reduction <maximumf>, %21, %cst_15 [1] : vector<8x128xf32> to vector<8xf32>
    %23 = vector.shape_cast %22 : vector<8xf32> to vector<8x1xf32>
    %24 = vector.broadcast %23 : vector<8x1xf32> to vector<8x128xf32>
    %25 = arith.subf %21, %24 : vector<8x128xf32>
    %26 = math.exp %25 : vector<8x128xf32>
    %cst_16 = arith.constant dense<0.000000e+00> : vector<8xf32>
    %27 = vector.multi_reduction <add>, %26, %cst_16 [1] : vector<8x128xf32> to vector<8xf32>
    %28 = vector.shape_cast %27 : vector<8xf32> to vector<8x1xf32>
    %29 = math.log %28 : vector<8x1xf32>
    %30 = vector.broadcast %29 : vector<8x1xf32> to vector<8x128xf32>
    %31 = arith.subf %25, %30 : vector<8x128xf32>
    %32 = vector.extract_strided_slice %31 {offsets = [0, 0], sizes = [8, 8], strides = [1, 1]} : vector<8x128xf32> to vector<8x8xf32>
    %c0_17 = arith.constant 0 : index
    %c0_18 = arith.constant 0 : index
    %33 = vector.load %arg7[%c0_17, %c0_18] : memref<8x8xf32, #tpu.memory_space<vmem>>, vector<8x8xf32>
    tpu.vector_store %arg7[%c0_17, %c0_18], %32 {strides = array<i32>} : memref<8x8xf32, #tpu.memory_space<vmem>>, vector<8x8xf32>,
    return
  }
  func.func @transform_0(%arg0: i32) -> (i32, i32) {
    %c0_i32 = arith.constant 0 : i32
    %c0_i32_0 = arith.constant 0 : i32
    return %arg0, %c0_i32 : i32, i32
  }
  func.func @transform_1(%arg0: i32) -> (i32, i32) {
    %c0_i32 = arith.constant 0 : i32
    %c0_i32_0 = arith.constant 0 : i32
    return %arg0, %c0_i32 : i32, i32
  }
  func.func @transform_2(%arg0: i32) -> (i32, i32) {
    %c0_i32 = arith.constant 0 : i32
    %c0_i32_0 = arith.constant 0 : i32
    %c0_i32_1 = arith.constant 0 : i32
    return %c0_i32, %c0_i32_0 : i32, i32
  }
  func.func @transform_3(%arg0: i32) -> (i32, i32) {
    %c0_i32 = arith.constant 0 : i32
    %c0_i32_0 = arith.constant 0 : i32
    %c0_i32_1 = arith.constant 0 : i32
    return %c0_i32, %c0_i32_0 : i32, i32
  }
  func.func @transform_4(%arg0: i32) -> (i32, i32) {
    %c0_i32 = arith.constant 0 : i32
    %c0_i32_0 = arith.constant 0 : i32
    %c0_i32_1 = arith.constant 0 : i32
    return %c0_i32, %c0_i32_0 : i32, i32
  }
  func.func @transform_5(%arg0: i32) -> (i32, i32) {
    %c0_i32 = arith.constant 0 : i32
    %c0_i32_0 = arith.constant 0 : i32
    %c0_i32_1 = arith.constant 0 : i32
    return %c0_i32, %c0_i32_0 : i32, i32
  }
  func.func @transform_6(%arg0: i32) -> (i32, i32) {
    %c0_i32 = arith.constant 0 : i32
    %c0_i32_0 = arith.constant 0 : i32
    return %arg0, %c0_i32 : i32, i32
  }
}

</mosaic_0001>

<bundles_post_ra>
// kernel: tpu_custom_call.1
= control target key start
LH: loop header
LB: loop body
LE: loop exit
PB: predicated region body
PF: predicated region fallthrough
CT: control target
= control target key end

     0   :  { %11 = vsyncpa [#allocation3], 0  ;;  %s481_s0 = inlined_call_operand.hbm [shape: f32[8,8], index: 0, kind: input, shape index: {}]   ;;  %s482_s1 = inlined_call_operand.hbm [shape: f32[8,8], index: 1, kind: input, shape index: {}]   ;;  %s483_s2 = inlined_call_operand.hbm [shape: f32[8,128], index: 2, kind: input, shape index: {}]   ;;  %s484_s3 = inlined_call_operand.vmem [shape: f32[8,128], index: 3, kind: input, shape index: {}]   ;;  %s485_s4 = inlined_call_operand.vmem [shape: f32[1,128], index: 4, kind: input, shape index: {}]   ;;  %s486_s5 = inlined_call_operand.vmem [shape: f32[1,128], index: 5, kind: input, shape index: {}]   ;;  %s487_s6 = inlined_call_operand.hbm [shape: f32[8,8], index: 6, kind: output, shape index: {}]  }
   0x1   :  { %12 = vsyncpa [#allocation6], 0 }
   0x2   :  { %13 = vsyncpa [#allocation4], 0  ;;  %s380_s21 = smov [#allocation5]   ;;  %s381_s23 = smov [#allocation2]  }
   0x3   :  { %s30_s22 = sshll.u32 %s380_s21, 4  ;;  %s20_s24 = sshll.u32 %s381_s23, 4  ;;  %s31_s22 = int_to_ptr.vmem [resolvable:$true] %s30_s22  ;;  %s21_s24 = int_to_ptr.vmem [resolvable:$true] %s20_s24 }
   0x4   :  { %s286_s27 = scalar_lea.hbm %s482_s1, 128 }
   0x5   :  { %p287_p0 = scmp.ne.s32.totalorder %s482_s1, %s286_s27  ;;  %p290_p1 = scmp.lt.u32.totalorder %s286_s27, %s482_s1 }
   0x7   :  { %p292_p2 = pnand %p290_p1, %p287_p0 }
   0x9   :  { %295 = shalt.err (!%p292_p2)
}
   0xa   :  { %s296_s8 = scalar_lea.vmem %s31_s22, 128  ;;  %p301_p4 = scmp.lt.s32.totalorder %s31_s22, %s31_s22 }
   0xb   :  { %p297_p3 = scmp.ne.s32.totalorder %s31_s22, %s296_s8  ;;  %p302_p5 = scmp.lt.s32.totalorder %s296_s8, %s296_s8 }
   0xd   :  { %p303_p6 = por %p302_p5, %p301_p4 }
   0xf   :  { %p304_p7 = pnand %p303_p6, %p297_p3 }
  0x11   :  { %307 = shalt.err (!%p304_p7)
}
  0x12   :  { %33 = dma.hbm_to_vmem [thread:$0]  %s482_s1, 128, %s31_s22, [#allocation6]  }
  0x13   :  { %s308_s13 = scalar_lea.hbm %s481_s0, 128 }
  0x14   :  { %p309_p8 = scmp.ne.s32.totalorder %s481_s0, %s308_s13  ;;  %p312_p9 = scmp.lt.u32.totalorder %s308_s13, %s481_s0 }
  0x16   :  { %p314_p10 = pnand %p312_p9, %p309_p8 }
  0x18   :  { %317 = shalt.err (!%p314_p10)
}
  0x19   :  { %s318_s18 = scalar_lea.vmem %s21_s24, 128  ;;  %p323_p12 = scmp.lt.s32.totalorder %s21_s24, %s21_s24 }
  0x1a   :  { %p319_p11 = scmp.ne.s32.totalorder %s21_s24, %s318_s18  ;;  %p324_p13 = scmp.lt.s32.totalorder %s318_s18, %s318_s18 }
  0x1c   :  { %p325_p0 = por %p324_p13, %p323_p12 }
  0x1e   :  { %p326_p1 = pnand %p325_p0, %p319_p11 }
  0x20   :  { %329 = shalt.err (!%p326_p1)
}
  0x21   :  { %23 = dma.hbm_to_vmem [thread:$0]  %s481_s0, 128, %s21_s24, [#allocation3]  }
  0x22   :  { %s382_s20 = smov [#allocation7]   ;;  %s330_s25 = scalar_lea.hbm %s483_s2, 128 }
  0x23   :  { %s40_s21 = sshll.u32 %s382_s20, 4  ;;  %p331_p2 = scmp.ne.s32.totalorder %s483_s2, %s330_s25  ;;  %s41_s21 = int_to_ptr.vmem [resolvable:$true] %s40_s21 }
  0x24   :  { %p334_p3 = scmp.lt.u32.totalorder %s330_s25, %s483_s2 }
  0x26   :  { %p336_p4 = pnand %p334_p3, %p331_p2 }
  0x28   :  { %339 = shalt.err (!%p336_p4)
}
  0x29   :  { %s340_s30 = scalar_lea.vmem %s41_s21, 128  ;;  %p345_p6 = scmp.lt.s32.totalorder %s41_s21, %s41_s21 }
  0x2a   :  { %p341_p5 = scmp.ne.s32.totalorder %s41_s21, %s340_s30  ;;  %p346_p7 = scmp.lt.s32.totalorder %s340_s30, %s340_s30 }
  0x2c   :  { %p347_p8 = por %p346_p7, %p345_p6 }
  0x2e   :  { %p348_p9 = pnand %p347_p8, %p341_p5 }
  0x30   :  { %351 = shalt.err (!%p348_p9)
}
  0x31   :  { %43 = dma.hbm_to_vmem [thread:$0]  %s483_s2, 128, %s41_s21, [#allocation6]  }
  0x32   :  { %374 = dma.done.wait [#allocation3], 128  }
  0x33   :  { %375 = vsyncadd [#allocation3], 4294967168 }
  0x34   :  { %376 = dma.done.wait [#allocation6], 256  }
  0x35   :  { %377 = vsyncadd [#allocation6], 4294967040  ;;  %v383_v0 = vmov 0.0   ;;  %vm384_vm0 = vmmov 0   ;;  %vm70_vm1 = vcmask 64512   ;;  %v60_v1 = vld [vmem:[#allocation7] sm:$0xff]  ;;  %v227_v5 = vlaneseq }
  0x36   :  { %266 = vmatprep.subr.mxu0 %v383_v0  ;;  %271 = vmatprep.subr.mxu1 %v383_v0  ;;  %v62_v2 = vld [vmem:[%s484_s3] sm:$0xff]  ;;  %v61_v4 = vld [vmem:[#allocation5] sm:$0xff]  ;;  %s385_s3 = smov [#allocation8]  }
  0x37   :  { %268 = vmatprep.mubr.msk.f32.mxu0 %vm384_vm0, %v383_v0  ;;  %273 = vmatprep.mubr.msk.f32.mxu1 %vm384_vm0, %v383_v0  ;;  %v59_v3 = vld [vmem:[#allocation2] sm:$0xff]  ;;  %v228_v10 = vand.u32 127, %v227_v5 }
  0x38   :  { %267 = vmatpush3.msra.mxu0 %v60_v1  ;;  %272 = vmatpush3.msra.mxu1 %v62_v2  ;;  %v258_v6 = vld [vmem:[%s485_s4] ss:$0 sm:$0xff]  ;;  %s248_s4 = sshll.u32 %s385_s3, 4  ;;  %s249_s4 = int_to_ptr.vmem [resolvable:$true] %s248_s4 }
  0x39   :  { %269 = vmatmul.mubr.msk.f32.vlgmr.msra.gmra.mrb[0].mxu0 %vm70_vm1, %v59_v3  ;;  %274 = vmatmul.mubr.msk.f32.vlgmr.msra.gmra.mrb[0].mxu1 %vm70_vm1, %v61_v4  ;;  %v260_v7 = vld [vmem:[%s486_s5] ss:$0 sm:$0xff]  ;;  %vm229_vm2 = vcmp.lt.s32.totalorder %v228_v10, 8  ;;  %s352_s5 = scalar_lea.vmem %s249_s4, 128  ;;  %p357_p11 = scmp.lt.s32.totalorder %s249_s4, %s249_s4 }
  0x3a   :  { %p353_p10 = scmp.ne.s32.totalorder %s249_s4, %s352_s5  ;;  %p358_p12 = scmp.lt.s32.totalorder %s352_s5, %s352_s5 }
  0x3c   :  { %p359_p13 = por %p358_p12, %p357_p11 }
  0x3e   :  { %p360_p0 = pnand %p359_p13, %p353_p10 }
 0x10c   :  { %v140_v8 = vpop.f32.mrb[0].mxu0  ;;  %v220_v9 = vpop.f32.mrb[0].mxu1 }
 0x10d   :  { %v141_v11 = vadd.f32 %v258_v6, %v140_v8  ;;  %v221_v12 = vadd.f32 %v260_v7, %v220_v9  ;;  %v270_v13 = vpop.f32.mrb[1].mxu0  ;;  %v275_v14 = vpop.f32.mrb[1].mxu1 }
 0x10f   :  { %v224_v15 = vmax.f32 %v141_v11, 0.0  ;;  %v225_v16 = vmax.f32 %v221_v12, 0.0 }
 0x111   :  { %v226_v17 = vmul.f32 %v225_v16, %v224_v15 }
 0x113   :  { %v230_v18 = vsel %vm229_vm2, %v226_v17, -inf }
 0x114   :  { %231 = vmax.xlane.f32.xlu0 %v230_v18 }
 0x1a1   :  { %v232_v19 = vpop.xlane.xlu0 %231 }
 0x1a2   :  { %v233_v20 = vsub.f32 %v230_v18, %v232_v19 }
 0x1a4   :  { %v234_v21 = vmul.f32 1.442695, %v233_v20 }
 0x1a6   :  { %282 = vpow2.f32 %v234_v21 }
 0x1b0   :  { %v283_v22 = vpop.eup %282 }
 0x1b1   :  { %236 = vadd.xlane.f32.xlu0 %v283_v22 }
 0x23e   :  { %v237_v23 = vpop.xlane.xlu0 %236 }
 0x23f   :  { %284 = vlog2.f32 %v237_v23 }
 0x249   :  { %v285_v24 = vpop.eup %284 }
 0x24a   :  { %v239_v25 = vmul.f32 0.6931472, %v285_v24 }
 0x24c   :  { %v240_v26 = vsub.f32 %v233_v20, %v239_v25 }
 0x24e   :  { %241 = vst.msk [vmem:[#allocation8] sm:$0xff] %vm70_vm1, %v240_v26 }
 0x24f   :  { %363 = shalt.err (!%p360_p0)
}
 0x250   :  { %s364_s14 = scalar_lea.hbm %s487_s6, 128 }
 0x251   :  { %p365_p1 = scmp.ne.s32.totalorder %s487_s6, %s364_s14  ;;  %p368_p2 = scmp.lt.u32.totalorder %s364_s14, %s487_s6 }
 0x253   :  { %p370_p3 = pnand %p368_p2, %p365_p1 }
 0x255   :  { %373 = shalt.err (!%p370_p3)
}
 0x256   :  { %251 = dma.vmem_to_hbm [thread:$0]  %s249_s4, 128, %s487_s6, [#allocation4]  }
 0x257   :  { %378 = dma.done.wait [#allocation4], 128  }
 0x258   :  { %379 = vsyncadd [#allocation4], 4294967168 }
 0x259   :  { %255 = vsyncpa [#allocation3], 1 }
 0x25a   :  { %256 = vsyncpa [#allocation6], 1 }
 0x25b   :  { %257 = vsyncpa [#allocation4], 1 }

</bundles_post_ra>
